<compile_context>
chip_gen: v5e
topology: v5e:2x2
jax: 0.10.0
libtpu: 0.0.40
codegen_flags: <defaults>
</compile_context>

<pallas_src>
import jax
import jax.numpy as jnp
from jax.experimental import pallas as pl
from jax.experimental.pallas import tpu as pltpu

_LANE = 128
_VMEM_BUDGET_BYTES = 24 * 1024 * 1024  # conservative per-step working-set cap


def _softmax_axis0_kernel(x_ref, o_ref):
    # Block is (seq, TILE_N): full reduction axis, lane-tiled hidden axis.
    x_exp = jnp.exp(x_ref[...].astype(jnp.float32))        # (seq, TILE_N) f32
    partition = jnp.sum(x_exp, axis=0, keepdims=True)       # (1, TILE_N)
    inv = pl.reciprocal(partition, approx=False)             # exact 1/x
    o_ref[...] = (x_exp * inv).astype(o_ref.dtype)           # VPU multiply


def _pick_tile_n(seq: int, hidden_p: int, itemsize: int, want: int = 512) -> int:
    """Largest 128-multiple tile that divides hidden_p and fits the VMEM budget."""
    tile = min(want, hidden_p)
    tile = max(_LANE, (tile // _LANE) * _LANE)
    while hidden_p % tile != 0:
        tile -= _LANE

    # footprint ~= double-buffered in + out tiles (input dtype) + f32 temps.
    def footprint(t):
        return seq * t * (4 * itemsize + 3 * 4)

    while tile > _LANE and footprint(tile) > _VMEM_BUDGET_BYTES:
        tile -= _LANE
        while hidden_p % tile != 0:
            tile -= _LANE
    return tile


def softmax_axis0(x: jax.Array) -> jax.Array:
    """exp(x) / sum_axis0(exp(x)) — matches the PyTorch Softmax module."""
    orig_shape = x.shape
    if x.ndim == 1:
        x2 = x.reshape(x.shape[0], 1)
    elif x.ndim == 2:
        x2 = x
    else:
        # Flatten trailing dims; axis-0 reduction + broadcast divide commute
        # with this reshape.
        x2 = x.reshape(x.shape[0], -1)

    seq, hidden = x2.shape

    # Lane-dense padding of the hidden axis.
    hidden_p = pl.cdiv(hidden, _LANE) * _LANE
    x_p = x2 if hidden_p == hidden else jnp.pad(x2, ((0, 0), (0, hidden_p - hidden)))

    tile_n = _pick_tile_n(seq, hidden_p, x.dtype.itemsize)
    grid = (hidden_p // tile_n,)

    itemsize = x.dtype.itemsize
    cost = pl.CostEstimate(
        flops=2 * seq * hidden_p,
        transcendentals=seq * hidden_p,
        bytes_accessed=2 * seq * hidden_p * itemsize,
    )

    out_p = pl.pallas_call(
        _softmax_axis0_kernel,
        out_shape=jax.ShapeDtypeStruct((seq, hidden_p), x.dtype),
        grid=grid,
        in_specs=[pl.BlockSpec((seq, tile_n), lambda j: (0, j))],
        out_specs=pl.BlockSpec((seq, tile_n), lambda j: (0, j)),
        compiler_params=pltpu.CompilerParams(
            dimension_semantics=("parallel",),
            vmem_limit_bytes=32 * 1024 * 1024,
        ),
        cost_estimate=cost,
    )(x_p)

    out = out_p if hidden_p == hidden else out_p[:, :hidden]
    return out.reshape(orig_shape)


if __name__ == "__main__":
    key = jax.random.PRNGKey(0)
    seq, hidden = 8, 32
    x = jax.random.normal(key, (seq, hidden), dtype=jnp.float32)

    out = softmax_axis0(x)
    out = jax.block_until_ready(out)

    # Reference in plain JAX (same formula as the PyTorch module).
    ref = jnp.exp(x) / jnp.sum(jnp.exp(x), axis=0, keepdims=True)
    assert out.shape == x.shape and out.dtype == x.dtype
    assert jnp.allclose(out, ref, atol=1e-6, rtol=1e-5), "mismatch vs reference"

    print("KERNEL_OK")
</pallas_src>

<mosaic_0001>
module attributes {stable_mosaic.version = 11 : i64} {
  func.func @_softmax_axis0_kernel(%arg0: i32, %arg1: memref<8x128xf32, #tpu.memory_space<vmem>>, %arg2: memref<8x128xf32, #tpu.memory_space<vmem>>) attributes {dimension_semantics = [#tpu.dimension_semantics<parallel>], iteration_bounds = array<i64: 1>, scalar_prefetch = 0 : i64, scratch_operands = 0 : i64, tpu.core_type = #tpu.core_type<tc>, window_params = [{transform_indices = @transform_0, window_bounds = array<i64: 8, 128>}, {transform_indices = @transform_1, window_bounds = array<i64: 8, 128>}]} {
    %c0 = arith.constant 0 : index
    %c0_0 = arith.constant 0 : index
    %0 = vector.load %arg1[%c0, %c0_0] : memref<8x128xf32, #tpu.memory_space<vmem>>, vector<8x128xf32>
    %1 = math.exp %0 : vector<8x128xf32>
    %cst = arith.constant dense<0.000000e+00> : vector<128xf32>
    %2 = vector.multi_reduction <add>, %1, %cst [0] : vector<8x128xf32> to vector<128xf32>
    %3 = vector.shape_cast %2 : vector<128xf32> to vector<1x128xf32>
    %4 = tpu.reciprocal %3 : vector<1x128xf32> -> vector<1x128xf32>
    %5 = vector.broadcast %4 : vector<1x128xf32> to vector<8x128xf32>
    %6 = arith.mulf %1, %5 : vector<8x128xf32>
    %c0_1 = arith.constant 0 : index
    %c0_2 = arith.constant 0 : index
    %7 = vector.load %arg2[%c0_1, %c0_2] : memref<8x128xf32, #tpu.memory_space<vmem>>, vector<8x128xf32>
    tpu.vector_store %arg2[%c0_1, %c0_2], %6 {strides = array<i32>} : memref<8x128xf32, #tpu.memory_space<vmem>>, vector<8x128xf32>,
    return
  }
  func.func @transform_0(%arg0: i32) -> (i32, i32) {
    %c0_i32 = arith.constant 0 : i32
    %c0_i32_0 = arith.constant 0 : i32
    return %c0_i32, %arg0 : i32, i32
  }
  func.func @transform_1(%arg0: i32) -> (i32, i32) {
    %c0_i32 = arith.constant 0 : i32
    %c0_i32_0 = arith.constant 0 : i32
    return %c0_i32, %arg0 : i32, i32
  }
}

</mosaic_0001>

<bundles_post_ra>
// kernel: tpu_custom_call.1
= control target key start
LH: loop header
LB: loop body
LE: loop exit
PB: predicated region body
PF: predicated region fallthrough
CT: control target
= control target key end

     0   :  { %6 = vsyncpa [#allocation3], 0  ;;  %s141_s0 = inlined_call_operand.hbm [shape: f32[8,128], index: 0, kind: input, shape index: {}]   ;;  %s142_s1 = inlined_call_operand.hbm [shape: f32[8,128], index: 1, kind: output, shape index: {}]  }
   0x1   :  { %7 = vsyncpa [#allocation4], 0  ;;  %s13_s8 = sshll.u32 %s141_s0, 4  ;;  %s123_s9 = smov [#allocation2]   ;;  %s14_s8 = int_to_ptr.hbm [resolvable:$true] %s13_s8 }
   0x2   :  { %s15_s10 = sshll.u32 %s123_s9, 4  ;;  %s16_s10 = int_to_ptr.vmem [resolvable:$true] %s15_s10 }
   0x3   :  { %18 = dma.hbm_to_vmem [thread:$0]  %s14_s8, 128, %s16_s10, [#allocation3]  }
   0x4   :  { %119 = dma.done.wait [#allocation3], 128  }
   0x5   :  { %120 = vsyncadd [#allocation3], 4294967168  ;;  %v23_v0 = vld [vmem:[#allocation2] sm:$0xff]  ;;  %s124_s0 = smov [#allocation5]   ;;  %s55_s14 = sshll.u32 %s142_s1, 4  ;;  %s56_s14 = int_to_ptr.hbm [resolvable:$true] %s55_s14 }
   0x6   :  { %v24_v1 = vmul.f32 1.442695, %v23_v0  ;;  %s53_s11 = sshll.u32 %s124_s0, 4  ;;  %s54_s11 = int_to_ptr.vmem [resolvable:$true] %s53_s11 }
   0x8   :  { %67 = vpow2.f32 %v24_v1 }
   0xe   :  { %v68_v2 = vpop.eup %67 }
   0xf   :  { %v26_v3 = vrot.slane %v68_v2, 4 }
  0x11   :  { %v27_v4 = vadd.f32 %v68_v2, %v26_v3 }
  0x13   :  { %v28_v5 = vrot.slane %v27_v4, 2 }
  0x15   :  { %v29_v6 = vadd.f32 %v28_v5, %v27_v4 }
  0x17   :  { %v30_v7 = vrot.slane %v29_v6, 1 }
  0x19   :  { %v31_v8 = vadd.f32 %v30_v7, %v29_v6 }
  0x1b   :  { %69 = vrcp.f32 %v31_v8  ;;  %v43_v11 = vand.u32 2147483648, %v31_v8  ;;  %vm37_vm0 = vweird.f32 %v31_v8  ;;  %v41_v13 = vand.u32 2147483647, %v31_v8 }
  0x1d   :  { %v44_v15 = vor.u32 1.1754944e-38, %v43_v11  ;;  %vm42_vm3 = vcmp.eq.f32.partialorder %v41_v13, 8.507059e+37 }
  0x21   :  { %v70_v9 = vpop.eup %69 }
  0x22   :  { %v33_v10 = vmul.f32 %v70_v9, %v31_v8  ;;  %vm38_vm1 = vweird.f32 %v70_v9 }
  0x23   :  { %vm39_vm2 = vmor %vm37_vm0, %vm38_vm1 }
  0x24   :  { %v34_v12 = vsub.f32 1.0, %v33_v10 }
  0x26   :  { %v35_v14 = vmul.f32 %v70_v9, %v34_v12 }
  0x28   :  { %v36_v16 = vadd.f32 %v70_v9, %v35_v14 }
  0x2a   :  { %v40_v17 = vsel %vm39_vm2, %v70_v9, %v36_v16 }
  0x2b   :  { %v45_v18 = vsel %vm42_vm3, %v44_v15, %v40_v17 }
  0x2c   :  { %v46_v19 = vmul.f32 %v68_v2, %v45_v18 }
  0x2e   :  { %47 = vst [vmem:[#allocation5] sm:$0xff] %v46_v19 }
  0x2f   :  { %58 = dma.vmem_to_hbm [thread:$0]  %s54_s11, 128, %s56_s14, [#allocation4]  }
  0x30   :  { %121 = dma.done.wait [#allocation4], 128  }
  0x31   :  { %122 = vsyncadd [#allocation4], 4294967168 }
  0x32   :  { %63 = vsyncpa [#allocation3], 1 }
  0x33   :  { %64 = vsyncpa [#allocation4], 1 }

</bundles_post_ra>
